<compile_context>
chip_gen: v5e
topology: v5e:2x2
jax: 0.10.0
libtpu: 0.0.40
codegen_flags: <defaults>
</compile_context>

<pallas_src>
import math

import jax
import jax.numpy as jnp
from jax.experimental import pallas as pl
from jax.experimental.pallas import tpu as pltpu


def _make_pe_table(max_len: int, d_model: int, dtype=jnp.float32) -> jnp.ndarray:
    """Deterministic sinusoidal PE table, shape (1, max_len, d_model)."""
    position = jnp.arange(0, max_len, dtype=jnp.float32)[:, None]             # (L, 1)
    div_item = jnp.exp(
        jnp.arange(0, d_model, 2, dtype=jnp.float32) * (-math.log(10000.0) / d_model)
    )                                                                          # (D/2,)
    angles = position * div_item                                               # (L, D/2)
    pe = jnp.zeros((max_len, d_model), dtype=jnp.float32)
    pe = pe.at[:, 0::2].set(jnp.sin(angles))
    pe = pe.at[:, 1::2].set(jnp.cos(angles))
    return pe[None, :, :].astype(dtype)                                        # (1, L, D)


def _add_pe_kernel(x_ref, pe_ref, o_ref):
    # x_ref/o_ref: (TR, LANE) tile of one batch row; pe_ref: matching (TR, LANE).
    o_ref[...] = (x_ref[...] + pe_ref[...]).astype(o_ref.dtype)


_TILE_BYTES = 4 * 1024 * 1024  # ~4 MiB per buffer target -> ~24 MiB resident total


def _lane_layout(S: int, D: int):
    """(rows, lane) view of one batch row so the kernel's last dim is lane-dense."""
    if D % 128 == 0:
        return S, D
    if (S * D) % 128 == 0:
        return (S * D) // 128, 128
    return S, D  # tiny/odd shapes: full-D block is still legal, just not lane-dense


def _row_tile(rows: int, lane: int, itemsize: int) -> int:
    budget = max(1, _TILE_BYTES // (lane * itemsize))
    if rows <= budget:
        return rows                       # full extent: always a legal block dim
    return max((budget // 8) * 8, 8)      # multiple of 8 keeps the (8,128) rule


def positional_encoding_forward(x: jnp.ndarray, pe_table: jnp.ndarray) -> jnp.ndarray:
    """x: (B, S, D); pe_table: (1, max_len, D). Returns x + pe[:, :S, :]."""
    B, S, D = x.shape
    max_len = pe_table.shape[1]
    if S > max_len:
        # mirror _expand_pe: rebuild the table if the sequence is longer
        pe_table = _make_pe_table(S, D, dtype=pe_table.dtype)
    pe_slice = pe_table[0, :S, :].astype(x.dtype)          # (S, D), match x dtype

    rows, lane = _lane_layout(S, D)
    x_r = x.reshape(B, rows, lane)
    pe_r = pe_slice.reshape(rows, lane)

    tr = _row_tile(rows, lane, x.dtype.itemsize)
    n_r = pl.cdiv(rows, tr)               # tail block (if any) is masked by Pallas

    out_r = pl.pallas_call(
        _add_pe_kernel,
        out_shape=jax.ShapeDtypeStruct((B, rows, lane), x.dtype),
        grid=(n_r, B),                     # B innermost: PE block reused across batch
        in_specs=[
            pl.BlockSpec((None, tr, lane), lambda r, b: (b, r, 0)),   # x tile
            pl.BlockSpec((tr, lane),       lambda r, b: (r, 0)),      # PE tile (no batch dep)
        ],
        out_specs=pl.BlockSpec((None, tr, lane), lambda r, b: (b, r, 0)),
        input_output_aliases={0: 0},       # out = x + pe: donate x's buffer
        compiler_params=pltpu.CompilerParams(
            dimension_semantics=("parallel", "parallel"),
        ),
    )(x_r, pe_r)
    return out_r.reshape(B, S, D)


if __name__ == "__main__":
    # small shapes consistent with forward: (batch, seq, d_model)
    B, S, D = 2, 8, 32
    MAX_LEN = 512

    key = jax.random.PRNGKey(0)
    x = jax.random.normal(key, (B, S, D), dtype=jnp.float32)

    pe_table = _make_pe_table(MAX_LEN, D)  # deterministic "buffer" init

    # plain-JAX reference (computed before the donating kernel call)
    ref = jax.block_until_ready(x + pe_table[:, :S, :])

    fwd = jax.jit(positional_encoding_forward)
    out = jax.block_until_ready(fwd(x, pe_table))

    assert out.shape == (B, S, D)
    assert jnp.allclose(out, ref, atol=1e-6), "mismatch vs reference"

    print("KERNEL_OK")
</pallas_src>

<mosaic_0001>
module attributes {stable_mosaic.version = 11 : i64} {
  func.func @_add_pe_kernel(%arg0: i32, %arg1: i32, %arg2: memref<1x2x128xf32, #tpu.memory_space<vmem>>, %arg3: memref<2x128xf32, #tpu.memory_space<vmem>>, %arg4: memref<1x2x128xf32, #tpu.memory_space<vmem>>) attributes {dimension_semantics = [#tpu.dimension_semantics<parallel>, #tpu.dimension_semantics<parallel>], iteration_bounds = array<i64: 1, 2>, scalar_prefetch = 0 : i64, scratch_operands = 0 : i64, tpu.core_type = #tpu.core_type<tc>, window_params = [{transform_indices = @transform_0, window_bounds = array<i64: 1, 2, 128>}, {transform_indices = @transform_1, window_bounds = array<i64: 2, 128>}, {transform_indices = @transform_2, window_bounds = array<i64: 1, 2, 128>}]} {
    %c0 = arith.constant 0 : index
    %c0_0 = arith.constant 0 : index
    %c0_1 = arith.constant 0 : index
    %0 = vector.load %arg2[%c0, %c0_0, %c0_1] : memref<1x2x128xf32, #tpu.memory_space<vmem>>, vector<1x2x128xf32>
    %1 = vector.shape_cast %0 : vector<1x2x128xf32> to vector<2x128xf32>
    %c0_2 = arith.constant 0 : index
    %c0_3 = arith.constant 0 : index
    %2 = vector.load %arg3[%c0_2, %c0_3] : memref<2x128xf32, #tpu.memory_space<vmem>>, vector<2x128xf32>
    %3 = arith.addf %1, %2 : vector<2x128xf32>
    %c0_4 = arith.constant 0 : index
    %c0_5 = arith.constant 0 : index
    %c0_6 = arith.constant 0 : index
    %4 = vector.load %arg4[%c0_4, %c0_5, %c0_6] : memref<1x2x128xf32, #tpu.memory_space<vmem>>, vector<1x2x128xf32>
    %5 = vector.shape_cast %4 : vector<1x2x128xf32> to vector<2x128xf32>
    %6 = vector.shape_cast %3 : vector<2x128xf32> to vector<1x2x128xf32>
    tpu.vector_store %arg4[%c0_4, %c0_5, %c0_6], %6 {strides = array<i32>} : memref<1x2x128xf32, #tpu.memory_space<vmem>>, vector<1x2x128xf32>,
    return
  }
  func.func @transform_0(%arg0: i32, %arg1: i32) -> (i32, i32, i32) {
    %c0_i32 = arith.constant 0 : i32
    %c0_i32_0 = arith.constant 0 : i32
    return %arg1, %arg0, %c0_i32 : i32, i32, i32
  }
  func.func @transform_1(%arg0: i32, %arg1: i32) -> (i32, i32) {
    %c0_i32 = arith.constant 0 : i32
    %c0_i32_0 = arith.constant 0 : i32
    return %arg0, %c0_i32 : i32, i32
  }
  func.func @transform_2(%arg0: i32, %arg1: i32) -> (i32, i32, i32) {
    %c0_i32 = arith.constant 0 : i32
    %c0_i32_0 = arith.constant 0 : i32
    return %arg1, %arg0, %c0_i32 : i32, i32, i32
  }
}

</mosaic_0001>

<bundles_post_ra>
// kernel: squeeze.1
= control target key start
LH: loop header
LB: loop body
LE: loop exit
PB: predicated region body
PF: predicated region fallthrough
CT: control target
= control target key end

     0   :  { %s7_s6 = smov 3  ;;  %s39_s9 = smov 96   ;;  %vm4_vm0 = vcmask 261120   ;;  %vm11_vm1 = vcmask 1048320   ;;  %vm18_vm2 = vcmask 785920   ;;  %vm25_vm3 = vcmask 523520   ;;  %s67_s0 = inlined_call_operand.vmem [shape: f32[1,8,32], index: 0, kind: input, shape index: {}]   ;;  %s68_s1 = inlined_call_operand.vmem [shape: f32[2,128], index: 1, kind: output, shape index: {}]  }
   0x1   :  { %v33_v0 = vld [vmem:[%s67_s0 + $0x3] ss:$4 sm:%s7_s6]   ;;  %s21_s10 = smov 3  ;;  %s14_s13 = smov 3 }
   0x2   :  { %9 = vrot.lane.b32.xlu0 %v33_v0, %s39_s9  ;;  %v35_v1 = vld [vmem:[%s67_s0 + $0x1] ss:$4 sm:%s21_s10]   ;;  %s40_s14 = smov 32   ;;  %s41_s17 = smov 64  }
   0x3   :  { %23 = vrot.lane.b32.xlu1 %v35_v1, %s40_s14  ;;  %v34_v2 = vld [vmem:[%s67_s0 + $0x2] ss:$4 sm:%s14_s13]   ;;  %s2_s18 = smov 3 }
   0x4   :  { %v3_v3 = vld [vmem:[%s67_s0] ss:$4 sm:%s2_s18]  }
   0x5   :  { %5 = vst.msk [vmem:[#allocation0] sm:$0x3] %vm4_vm0, %v3_v3  }
   0xa   :  { %16 = vrot.lane.b32.xlu0 %v34_v2, %s41_s17 }
  0x74   :  { %v10_v4 = vpop.permute.xlu0 %9  }
  0x75   :  { %12 = vst.msk [vmem:[#allocation0] sm:$0x3] %vm11_vm1, %v10_v4   ;;  %v24_v5 = vpop.permute.xlu1 %23  }
  0x7c   :  { %v17_v6 = vpop.permute.xlu0 %16  }
  0x7d   :  { %19 = vst.msk [vmem:[#allocation0] sm:$0x3] %vm18_vm2, %v17_v6  }
  0x7e   :  { %26 = vst.msk [vmem:[#allocation0] sm:$0x3] %vm25_vm3, %v24_v5  }
  0x85   :  { %v29_v7 = vld [vmem:[#allocation0] sm:$0x3] }
  0x86   :  { %32 = vst [vmem:[%s68_s1] sm:$0x3] %v29_v7 }

// kernel: positional_encoding_forward.1
= control target key start
LH: loop header
LB: loop body
LE: loop exit
PB: predicated region body
PF: predicated region fallthrough
CT: control target
= control target key end

     0   :  { %s354_s9 = smov 0   ;;  %s331_s10 = smov 0   ;;  %s368_s0 = inlined_call_operand.vmem [shape: f32[2,2,128], index: 0, kind: input, shape index: {}, may-alias: {0,2}]   ;;  %s369_s1 = inlined_call_operand.vmem [shape: f32[2,128], index: 1, kind: input, shape index: {}]   ;;  %s370_s2 = inlined_call_operand.vmem [shape: f32[2,2,128], index: 2, kind: output, shape index: {}, may-alias: {0,2}]  }
   0x1   :  { %s335_s11 = smov 0  }
   0x2 LB: > { %s21_s12 = sadd.s32 1, %s333_s10  ;;  %p286_p0 = scmp.ge.s32.totalorder %s337_s11, 1  ;;  %s337_s11 = sphi %s335_s11, %s12_s11   ;;  %s333_s10 = sphi %s331_s10, %s332_s10   ;;  %s329_s9 = sphi %s354_s9, %s371_s9  }
   0x3   : > { %p22_p1 = scmp.ge.s32.totalorder %s21_s12, 2  ;;  %p139_p2 = scmp.lt.s32.totalorder %s337_s11, 3 }
   0x5   : > { %s373_s12 = smov (%p22_p1, %s21_s12), 0  ;;  %p140_p3 = pnand %p286_p0, %p139_p2 }
   0x6   : > { %p169_p4 = scmp.lt.s32.totalorder (!%p140_p3), %s329_s9, 1 }
   0x7   : > { %143 = sbr.rel (%p140_p3) target bundleno = 19 (0x13), region = 28 }
   0xc   : > { %s375_s9 = smov (!%p169_p4, %s329_s9), 1  ;;  %v188_v0 = vld [vmem:[%s369_s1] sm:$0x3] }
   0xd   : > { %s287_s13 = sshll.u32 %s375_s9, 1 }
   0xe   : > { %s175_s18 = scalar_lea.vmem %s368_s0, %s287_s13  ;;  %s186_s21 = scalar_lea.vmem %s370_s2, %s287_s13 }
   0xf   : > { %v187_v1 = vld [vmem:[%s175_s18] sm:$0x3] }
  0x10   : > { %v189_v2 = vadd.f32 %v188_v0, %v187_v1 }
  0x12   : > { %190 = vst [vmem:[%s186_s21] sm:$0x3] %v189_v2 }
  0x13 PF: > { %s12_s11 = sadd.s32 1, %s337_s11   ;;  %s371_s9 = smov %s333_s10 }
  0x14   : > { %p9_p5 = scmp.ge.s32.totalorder %s12_s11, 4   ;;  %s332_s10 = smov %s373_s12  }
  0x16   :  { %11 = sbr.rel (!%p9_p5) target bundleno = 2 (0x2), region = 61 }

</bundles_post_ra>
